<compile_context>
chip_gen: v6e
topology: v6e:2x2x1
jax: 0.10.0
libtpu: 0.0.40
codegen_flags: <defaults>
</compile_context>

<pallas_src>
import functools

import jax
import jax.numpy as jnp
from jax.experimental import pallas as pl
from jax.experimental.pallas import tpu as pltpu


def _round_up(x, m):
    return ((x + m - 1) // m) * m


def _pad2d(arr, rows, cols):
    return jnp.pad(arr, ((0, rows - arr.shape[0]), (0, cols - arr.shape[1])))


# --------------------------------------------------------------------------- #
# Pass 1: ax = (x @ A^T) * scaling   (skinny, rank-wide; grid over M, K only)  #
# --------------------------------------------------------------------------- #
def lora_ax_kernel(x_ref, a_ref, ax_ref, acc_ref, *, scaling):
    # x_ref:   (tm, tk)       activation tile
    # a_ref:   (tk, r_pad)    A.weight^T tile (rank padded to lane width)
    # ax_ref:  (tm, r_pad)    output tile (compute dtype), scaling pre-applied
    # acc_ref: (tm, r_pad) f32 accumulator, resident across K
    k = pl.program_id(1)

    @pl.when(k == 0)
    def _():
        acc_ref[...] = jnp.zeros_like(acc_ref)

    acc_ref[...] += jnp.dot(x_ref[...], a_ref[...],
                            preferred_element_type=jnp.float32)

    @pl.when(k == pl.num_programs(1) - 1)
    def _():
        # Scale the tiny (tm, rank) intermediate here, then cast once.
        ax_ref[...] = (acc_ref[...] * scaling).astype(ax_ref.dtype)


# --------------------------------------------------------------------------- #
# Pass 2: y = x @ W^T + bias + ax @ B^T   (main M/N/K-tiled matmul)            #
# --------------------------------------------------------------------------- #
def lora_linear_kernel(x_ref, w_ref, bias_ref, ax_ref, b_ref, o_ref, acc_ref):
    # x_ref:    (tm, tk)       activation tile
    # w_ref:    (tk, tn)       origin.weight^T tile
    # bias_ref: (1, tn)        origin.bias tile (f32)
    # ax_ref:   (tm, r_pad)    precomputed, pre-scaled LoRA intermediate
    # b_ref:    (r_pad, tn)    B.weight^T tile
    # o_ref:    (tm, tn)       output tile
    # acc_ref:  (tm, tn) f32   base-path accumulator, resident across K
    k = pl.program_id(2)

    @pl.when(k == 0)
    def _():
        acc_ref[...] = jnp.zeros_like(acc_ref)

    acc_ref[...] += jnp.dot(x_ref[...], w_ref[...],
                            preferred_element_type=jnp.float32)

    @pl.when(k == pl.num_programs(2) - 1)
    def _():
        # The (tm, r_pad) @ (r_pad, tn) B-matmul happens exactly once per tile.
        lora = jnp.dot(ax_ref[...], b_ref[...],
                       preferred_element_type=jnp.float32)
        o_ref[...] = (acc_ref[...] + bias_ref[...] + lora).astype(o_ref.dtype)


# --------------------------------------------------------------------------- #
# One-time parameter preparation (hoisted out of the per-call path).           #
# --------------------------------------------------------------------------- #
def prepare_lora_params(w, bias, a_w, b_w, *, rank=8, alpha=32,
                        tn=512, tk=1024, compute_dtype=jnp.bfloat16):
    """w: (out, in). bias: (out,). a_w: (rank, in). b_w: (out, rank).
    Pads/transposes/casts weights once; returns a dict to pass to forward()."""
    out_f, in_f = w.shape
    assert a_w.shape == (rank, in_f)
    assert b_w.shape == (out_f, rank)

    # Keep tn/tk 256-aligned (full MXU width on v6e/v7x); never clamp to 128.
    tn = min(tn, _round_up(out_f, 256))
    tk = min(tk, _round_up(in_f, 256))

    n_pad = _round_up(out_f, tn)
    k_pad = _round_up(in_f, tk)
    r_pad = _round_up(rank, 128)          # lane-dense LoRA intermediate

    return dict(
        w_p=_pad2d(w.T, k_pad, n_pad).astype(compute_dtype),       # (K, N)
        a_p=_pad2d(a_w.T, k_pad, r_pad).astype(compute_dtype),     # (K, R)
        b_p=_pad2d(b_w.T, r_pad, n_pad).astype(compute_dtype),     # (R, N)
        bias_p=jnp.pad(bias, (0, n_pad - out_f)).reshape(1, n_pad)
                  .astype(jnp.float32),                            # (1, N)
        scaling=float(alpha) / float(rank),
        out_f=out_f, in_f=in_f, rank=rank,
        tn=tn, tk=tk, n_pad=n_pad, k_pad=k_pad, r_pad=r_pad,
        compute_dtype=compute_dtype,
    )


# --------------------------------------------------------------------------- #
# Forward pass.                                                                 #
# --------------------------------------------------------------------------- #
def lora_linear_forward(x, params, *, tm=512,
                        vmem_limit_bytes=48 * 1024 * 1024):
    """x: (batch, seq, in_features) -> (batch, seq, out_features)."""
    batch, seq, in_f = x.shape
    assert in_f == params["in_f"]
    compute_dtype = params["compute_dtype"]
    out_dtype = x.dtype
    tn, tk = params["tn"], params["tk"]
    n_pad, k_pad, r_pad = params["n_pad"], params["k_pad"], params["r_pad"]

    M = batch * seq
    # Sublane multiple: 8 for f32, 16 for bf16 (packed).
    sub_mult = 8 * max(1, 4 // jnp.dtype(compute_dtype).itemsize)
    tm = min(tm, _round_up(M, sub_mult))

    # v7x megacore: if the parallel (i, j) grid would be one block, split M into
    # two tiles (shrink tm before tn) so both TensorCores get work.
    if _round_up(M, tm) // tm == 1 and n_pad // tn == 1:
        half = _round_up((M + 1) // 2, sub_mult)
        if sub_mult <= half < tm:
            tm = half
    m_pad = _round_up(M, tm)

    x_p = _pad2d(x.reshape(M, in_f), m_pad, k_pad).astype(compute_dtype)

    # ---- Pass 1: ax = (x @ A^T) * scaling ---------------------------------- #
    ax = pl.pallas_call(
        functools.partial(lora_ax_kernel, scaling=params["scaling"]),
        out_shape=jax.ShapeDtypeStruct((m_pad, r_pad), compute_dtype),
        grid_spec=pltpu.PrefetchScalarGridSpec(
            num_scalar_prefetch=0,
            grid=(m_pad // tm, k_pad // tk),
            in_specs=[
                pl.BlockSpec((tm, tk), lambda i, k: (i, k)),        # x tile
                pl.BlockSpec((tk, r_pad), lambda i, k: (k, 0)),     # A^T tile
            ],
            out_specs=pl.BlockSpec((tm, r_pad), lambda i, k: (i, 0)),
            scratch_shapes=[pltpu.VMEM((tm, r_pad), jnp.float32)],
        ),
        compiler_params=pltpu.CompilerParams(
            dimension_semantics=("parallel", "arbitrary"),
            vmem_limit_bytes=vmem_limit_bytes,
        ),
    )(x_p, params["a_p"])

    # ---- Pass 2: y = x @ W^T + bias + ax @ B^T ----------------------------- #
    out2d = pl.pallas_call(
        lora_linear_kernel,
        out_shape=jax.ShapeDtypeStruct((m_pad, n_pad), out_dtype),
        grid_spec=pltpu.PrefetchScalarGridSpec(
            num_scalar_prefetch=0,
            grid=(m_pad // tm, n_pad // tn, k_pad // tk),
            in_specs=[
                pl.BlockSpec((tm, tk), lambda i, j, k: (i, k)),      # x tile
                pl.BlockSpec((tk, tn), lambda i, j, k: (k, j)),      # W^T tile
                pl.BlockSpec((1, tn), lambda i, j, k: (0, j)),       # bias tile
                pl.BlockSpec((tm, r_pad), lambda i, j, k: (i, 0)),   # ax (per M-tile)
                pl.BlockSpec((r_pad, tn), lambda i, j, k: (0, j)),   # B^T tile
            ],
            out_specs=pl.BlockSpec((tm, tn), lambda i, j, k: (i, j)),
            scratch_shapes=[pltpu.VMEM((tm, tn), jnp.float32)],
        ),
        compiler_params=pltpu.CompilerParams(
            dimension_semantics=("parallel", "parallel", "arbitrary"),
            vmem_limit_bytes=vmem_limit_bytes,
        ),
    )(x_p, params["w_p"], params["bias_p"], ax, params["b_p"])

    return out2d[:M, :params["out_f"]].reshape(batch, seq, params["out_f"])


if __name__ == "__main__":
    # Small shapes consistent with a Linear on a (batch, seq, hidden) activation.
    batch, seq = 2, 8
    in_features, out_features = 32, 64
    rank, alpha = 8, 32

    key = jax.random.PRNGKey(0)
    kx, kw, kb, ka, kbw = jax.random.split(key, 5)

    x = jax.random.normal(kx, (batch, seq, in_features), dtype=jnp.float32)

    # origin nn.Linear(in, out): weight (out, in), bias (out,)
    w = jax.random.normal(kw, (out_features, in_features), dtype=jnp.float32) * 0.05
    bias = jax.random.normal(kb, (out_features,), dtype=jnp.float32) * 0.01

    # LoRA params. Module init has B = zeros; use a small nonzero B here so the
    # LoRA path is actually exercised numerically.
    a_w = jax.random.normal(ka, (rank, in_features), dtype=jnp.float32) * 0.02
    b_w = jax.random.normal(kbw, (out_features, rank), dtype=jnp.float32) * 0.02

    # Reference in plain JAX.
    scaling = alpha / rank
    ref = (jnp.einsum("bsi,oi->bso", x, w) + bias
           + jnp.einsum("bsr,or->bso",
                        jnp.einsum("bsi,ri->bsr", x, a_w), b_w) * scaling)

    # f32 compute: exact check.
    params_f32 = prepare_lora_params(w, bias, a_w, b_w, rank=rank, alpha=alpha,
                                     compute_dtype=jnp.float32)
    y32 = jax.block_until_ready(lora_linear_forward(x, params_f32))
    assert y32.shape == (batch, seq, out_features)
    assert jnp.allclose(y32, ref, atol=1e-5, rtol=1e-5)

    # bf16 compute (the production default; MXU accumulation stays f32).
    params_bf16 = prepare_lora_params(w, bias, a_w, b_w, rank=rank, alpha=alpha)
    y16 = jax.block_until_ready(lora_linear_forward(x, params_bf16))
    assert y16.shape == (batch, seq, out_features)
    assert jnp.allclose(y16, ref, atol=8e-2, rtol=8e-2)

    print("KERNEL_OK")
</pallas_src>

<mosaic_0001>
module attributes {stable_mosaic.version = 11 : i64} {
  func.func @lora_ax_kernel(%arg0: i32, %arg1: i32, %arg2: memref<8x256xf32, #tpu.memory_space<vmem>>, %arg3: memref<256x128xf32, #tpu.memory_space<vmem>>, %arg4: memref<8x128xf32, #tpu.memory_space<vmem>>, %arg5: memref<8x128xf32, #tpu.memory_space<vmem>>) attributes {dimension_semantics = [#tpu.dimension_semantics<parallel>, #tpu.dimension_semantics<arbitrary>], iteration_bounds = array<i64: 2, 1>, scalar_prefetch = 0 : i64, scratch_operands = 1 : i64, tpu.core_type = #tpu.core_type<tc>, window_params = [{transform_indices = @transform_0, window_bounds = array<i64: 8, 256>}, {transform_indices = @transform_1, window_bounds = array<i64: 256, 128>}, {transform_indices = @transform_2, window_bounds = array<i64: 8, 128>}]} {
    %c0_i32 = arith.constant 0 : i32
    %0 = arith.cmpi eq, %arg1, %c0_i32 : i32
    %1 = arith.extui %0 : i1 to i32
    %c0_i32_0 = arith.constant 0 : i32
    %2 = arith.cmpi ne, %1, %c0_i32_0 : i32
    scf.if %2 {
      %cst_10 = arith.constant 0.000000e+00 : f32
      %12 = vector.broadcast %cst_10 : f32 to vector<8x128xf32>
      %c0_11 = arith.constant 0 : index
      %c0_12 = arith.constant 0 : index
      %13 = vector.load %arg5[%c0_11, %c0_12] : memref<8x128xf32, #tpu.memory_space<vmem>>, vector<8x128xf32>
      tpu.vector_store %arg5[%c0_11, %c0_12], %12 {strides = array<i32>} : memref<8x128xf32, #tpu.memory_space<vmem>>, vector<8x128xf32>,
    } else {
    }
    %c0 = arith.constant 0 : index
    %c0_1 = arith.constant 0 : index
    %3 = vector.load %arg5[%c0, %c0_1] : memref<8x128xf32, #tpu.memory_space<vmem>>, vector<8x128xf32>
    %c0_2 = arith.constant 0 : index
    %c0_3 = arith.constant 0 : index
    %4 = vector.load %arg2[%c0_2, %c0_3] : memref<8x256xf32, #tpu.memory_space<vmem>>, vector<8x256xf32>
    %c0_4 = arith.constant 0 : index
    %c0_5 = arith.constant 0 : index
    %5 = vector.load %arg3[%c0_4, %c0_5] : memref<256x128xf32, #tpu.memory_space<vmem>>, vector<256x128xf32>
    %cst = arith.constant dense<0.000000e+00> : vector<8x128xf32>
    %6 = tpu.matmul %4, %5, %cst {dimension_numbers = #tpu.dot_dimension_numbers<[1], [0], [0], [1], [0, 0, 1, 1], [], []>} : vector<8x256xf32>, vector<256x128xf32>, vector<8x128xf32> -> vector<8x128xf32>
    %7 = arith.addf %3, %6 : vector<8x128xf32>
    %c0_6 = arith.constant 0 : index
    %c0_7 = arith.constant 0 : index
    %8 = vector.load %arg5[%c0_6, %c0_7] : memref<8x128xf32, #tpu.memory_space<vmem>>, vector<8x128xf32>
    tpu.vector_store %arg5[%c0_6, %c0_7], %7 {strides = array<i32>} : memref<8x128xf32, #tpu.memory_space<vmem>>, vector<8x128xf32>,
    %c0_i32_8 = arith.constant 0 : i32
    %9 = arith.cmpi eq, %arg1, %c0_i32_8 : i32
    %10 = arith.extui %9 : i1 to i32
    %c0_i32_9 = arith.constant 0 : i32
    %11 = arith.cmpi ne, %10, %c0_i32_9 : i32
    scf.if %11 {
      %c0_10 = arith.constant 0 : index
      %c0_11 = arith.constant 0 : index
      %12 = vector.load %arg5[%c0_10, %c0_11] : memref<8x128xf32, #tpu.memory_space<vmem>>, vector<8x128xf32>
      %cst_12 = arith.constant 4.000000e+00 : f32
      %13 = vector.broadcast %cst_12 : f32 to vector<8x128xf32>
      %14 = arith.mulf %12, %13 : vector<8x128xf32>
      %c0_13 = arith.constant 0 : index
      %c0_14 = arith.constant 0 : index
      %15 = vector.load %arg4[%c0_13, %c0_14] : memref<8x128xf32, #tpu.memory_space<vmem>>, vector<8x128xf32>
      tpu.vector_store %arg4[%c0_13, %c0_14], %14 {strides = array<i32>} : memref<8x128xf32, #tpu.memory_space<vmem>>, vector<8x128xf32>,
    } else {
    }
    return
  }
  func.func @transform_0(%arg0: i32, %arg1: i32) -> (i32, i32) {
    %c0_i32 = arith.constant 0 : i32
    return %arg0, %arg1 : i32, i32
  }
  func.func @transform_1(%arg0: i32, %arg1: i32) -> (i32, i32) {
    %c0_i32 = arith.constant 0 : i32
    %c0_i32_0 = arith.constant 0 : i32
    return %arg1, %c0_i32 : i32, i32
  }
  func.func @transform_2(%arg0: i32, %arg1: i32) -> (i32, i32) {
    %c0_i32 = arith.constant 0 : i32
    %c0_i32_0 = arith.constant 0 : i32
    return %arg0, %c0_i32 : i32, i32
  }
}

</mosaic_0001>

<bundles_post_ra>
// kernel: tpu_custom_call.1
= control target key start
LH: loop header
LB: loop body
LE: loop exit
PB: predicated region body
PF: predicated region fallthrough
CT: control target
= control target key end

     0   :  { %7 = vsyncpa [#allocation4], 0  ;;  %s885_s0 = inlined_call_operand.hbm [shape: f32[16,256], index: 0, kind: input, shape index: {}]   ;;  %s886_s1 = inlined_call_operand.hbm [shape: f32[256,128], index: 1, kind: input, shape index: {}]   ;;  %s887_s2 = inlined_call_operand.hbm [shape: f32[16,128], index: 2, kind: output, shape index: {}]  }
   0x1   :  { %9 = vsyncpa [#allocation4 + $0x1], 0 }
   0x2   :  { %10 = vsyncpa [#allocation7], 0 }
   0x3   :  { %11 = vsyncpa [#allocation5], 0 }
   0x4   :  { %13 = vsyncpa [#allocation5 + $0x1], 0  ;;  %s713_s9 = smov 0   ;;  %s715_s10 = smov 0  }
   0x5   :  { %s717_s11 = smov 0   ;;  %s719_s12 = smov 0  }
   0x6   :  { %s721_s13 = smov 0   ;;  %s723_s14 = smov 0  }
   0x7 LB: > { %s426_s15 = sadd.s32 4294967295, %s691_s14   ;;  %s427_s16 = sadd.s32 4294967294, %s691_s14   ;;  %s691_s14 = sphi %s723_s14, %s19_s14   ;;  %s687_s13 = sphi %s721_s13, %s905_s13   ;;  %s683_s12 = sphi %s719_s12, %s904_s12   ;;  %s679_s11 = sphi %s717_s11, %s903_s11   ;;  %s675_s10 = sphi %s715_s10, %s902_s10   ;;  %s671_s9 = sphi %s713_s9, %s901_s9  }
   0x8   : > { %p53_p0 = scmp.ne.s32.totalorder %s675_s10, %s671_s9  ;;  %p747_p1 = scmp.eq.s32.totalorder %s426_s15, 0 }
   0x9   : > { %p751_p2 = scmp.eq.s32.totalorder %s426_s15, 1  ;;  %p109_p3 = scmp.eq.s32.totalorder %s427_s16, 1 }
   0xa   : > { %p757_p4 = por %p747_p1, %p53_p0  ;;  %p428_p5 = scmp.ge.s32.totalorder %s691_s14, 1 }
   0xb   : > { %p762_p6 = por %p109_p3, %p53_p0  ;;  %p116_p7 = scmp.lt.s32.totalorder %s691_s14, 3 }
   0xc   : > { %s891_s19 = scalar_select %p757_p4, 1, 0 }
   0xd   : > { %s892_s20 = scalar_select %p762_p6, 1, 0 }
   0xe   : > { %p767_p8 = pnand %p428_p5, %p116_p7  ;;  %s693_s22 = smov [#allocation6]  }
   0xf   : > { %s131_s23 = sshll.u32 %s693_s22, 4  ;;  %s31_s25 = sadd.s32 1, %s687_s13  ;;  %s132_s23 = int_to_ptr.vmem [resolvable:$true] %s131_s23 }
  0x10   : > { %p486_p9 = pneg %p767_p8  ;;  %s564_s26 = scalar_lea.vmem %s132_s23, 4096 }
  0x11   : > { %p565_p13 = scmp.ne.s32.totalorder %s132_s23, %s564_s26  ;;  %p572_p5 = scmp.lt.s32.totalorder %s132_s23, %s132_s23 }
  0x12   : > { %p776_p11 = pnand %p486_p9, %p747_p1  ;;  %p573_p7 = scmp.lt.s32.totalorder %s564_s26, %s564_s26 }
  0x14   : > { %p555_p12 = pneg %p776_p11  ;;  %p574_p6 = por %p573_p7, %p572_p5 }
  0x16   : > { %p567_p0 = pnand %p565_p13, %p555_p12 }
  0x18   : > { %p568_p3 = pneg %p567_p0 }
  0x1a   : > { %p575_p4 = pnand %p574_p6, %p568_p3 }
  0x1c   : > { %578 = shalt.err (!%p575_p4)
}
  0x1d   : > { %s694_s27 = smov 128   ;;  %s695_s28 = smov 8  }
  0x1e   : > { %489 = dma.hbm_to_vmem [thread:$0]  (!%p776_p11), %s886_s1, 4096, %s132_s23, [#allocation7], %s694_s27, %s694_s27, %s695_s28  }
  0x1f   : > { %p33_p6 = scmp.ge.s32.totalorder %s31_s25, 2  ;;  %s40_s3 = sadd.s32 1, %s679_s11 }
  0x20   : > { %p47_p4 = scmp.ne.s32.totalorder %s679_s11, %s675_s10  ;;  %p48_p9 = scmp.eq.s32.totalorder %s691_s14, 0 }
  0x21   : > { %s907_s25 = smov (%p33_p6, %s31_s25), 0  ;;  %p499_p0 = scmp.lt.s32.totalorder %s691_s14, 2 }
  0x22   : > { %p794_p12 = por %p48_p9, %p47_p4  ;;  %p800_p13 = por %p751_p2, %p47_p4 }
  0x23   : > { %s35_s6 = ssub.s32 %s687_s13, %s907_s25  ;;  %s145_s7 = sand.u32 1, %s679_s11  }
  0x24   : > { %p38_p11 = scmp.eq.s32.totalorder %s35_s6, 0  ;;  %s431_s8 = sshll.u32 %s145_s7, 4 }
  0x25   : > { %s442_s16 = sshll.u32 %s687_s13, 8  ;;  %s149_s26 = scalar_lea.vmem [#allocation3], %s431_s8 }
  0x26   : > { %s809_s15 = scalar_select %p38_p11, %s679_s11, %s40_s3  }
  0x27   : > { %s157_s24 = scalar_lea.hbm %s885_s0, %s442_s16  ;;  %s159_s27 = sshll.u32 %s149_s26, 4  ;;  %s160_s27 = int_to_ptr.vmem [resolvable:$true] %s159_s27 }
  0x28   : > { %p817_p2 = pnand %p499_p0, %p794_p12  ;;  %s146_s28 = scalar_lea.sflag [#allocation4], %s145_s7 }
  0x29   : > { %s592_s29 = scalar_lea.vmem %s160_s27, 256  ;;  %s696_s30 = smov [#allocation3]  }
  0x2a   : > { %p581_p3 = pneg %p817_p2  ;;  %p593_p5 = scmp.ne.s32.totalorder %s160_s27, %s592_s29 }
  0x2b   : > { %s597_s3 = sshll.u32 %s696_s30, 4  ;;  %s598_s3 = int_to_ptr.vmem [resolvable:$false] %s597_s3 }
  0x2c   : > { %p595_p7 = pnand %p593_p5, %p581_p3  ;;  %s599_s6 = scalar_lea.vmem %s598_s3, 512 }
  0x2d   : > { %p600_p4 = scmp.lt.s32.totalorder %s160_s27, %s598_s3  ;;  %p601_p9 = scmp.lt.s32.totalorder %s599_s6, %s592_s29 }
  0x2e   : > { %p596_p6 = pneg %p595_p7 }
  0x2f   : > { %p602_p11 = por %p601_p9, %p600_p4 }
  0x31   : > { %p603_p10 = pnand %p602_p11, %p596_p6 }
  0x33   : > { %606 = shalt.err (!%p603_p10)
}
  0x34   : > { %493 = dma.hbm_to_vmem [thread:$0]  (!%p817_p2), %s157_s24, 256, %s160_s27, %s146_s28  }
  0x35   : > { %168 = sbr.rel (%p767_p8) target bundleno = 306 (0x132), region = 28  ;;  %s828_s4 = sand.u32 (!%p767_p8), 1, %s675_s10  }
  0x36   : > { %s435_s7 = sshll.u32 (!%p767_p8), %s828_s4, 4  ;;  %s171_s8 = scalar_lea.sflag (!%p767_p8), [#allocation4], %s828_s4 }
  0x37   : > { %s832_s16 = scalar_lea.vmem (!%p767_p8), [#allocation3], %s435_s7  ;;  %p898_p12 = scmp.ne.s32.totalorder (!%p767_p8), %s891_s19, 0 }
  0x3a   : > { %658 = dma.done.wait (%p898_p12), %s171_s8, 256  }
  0x3b   : > { %660 = vsyncadd (%p898_p12), %s171_s8, 4294967040 }
  0x3c   : > { %662 = dma.done.wait (%p747_p1), [#allocation7], 4096  }
  0x3d   : > { %664 = vsyncadd (%p747_p1), [#allocation7], 4294963200  ;;  %v240_v0 = vld [vmem:[#allocation6 + $0xf8] sm:$0xff]  ;;  %v239_v2 = vld [vmem:[#allocation6 + $0xf0] sm:$0xff]  ;;  %s437_s17 = sshll.u32 %s828_s4, 3  ;;  %s439_s19 = sshll.u32 %s683_s12, 7 }
  0x3e   : > { %v224_v1 = vld [vmem:[#allocation6 + $0x78] sm:$0xff]  ;;  %443 = vmatprep.subr.mxu0 %v240_v0  ;;  %v223_v3 = vld [vmem:[#allocation6 + $0x70] sm:$0xff]  ;;  %v238_v4 = vld [vmem:[#allocation6 + $0xe8] sm:$0xff]  ;;  %s198_s21 = scalar_lea.vmem [#allocation8], %s437_s17  ;;  %s331_s26 = scalar_lea.hbm %s887_s2, %s439_s19 }
  0x3f   : > { %444 = vmatpush3.msra.mxu0 %v224_v1  ;;  %v222_v5 = vld [vmem:[#allocation6 + $0x68] sm:$0xff]  ;;  %v237_v6 = vld [vmem:[#allocation6 + $0xe0] sm:$0xff]  ;;  %v236_v8 = vld [vmem:[#allocation6 + $0xd8] sm:$0xff]  ;;  %s333_s22 = sshll.u32 %s198_s21, 4  ;;  %s320_s27 = scalar_lea.sflag [#allocation5], %s828_s4  ;;  %s334_s22 = int_to_ptr.vmem [resolvable:$true] %s333_s22 }
  0x40   : > { %445 = vmatprep.subr.mxu0 %v239_v2  ;;  %v221_v7 = vld [vmem:[#allocation6 + $0x60] sm:$0xff]  ;;  %v220_v9 = vld [vmem:[#allocation6 + $0x58] sm:$0xff]  ;;  %v235_v10 = vld [vmem:[#allocation6 + $0xd0] sm:$0xff]  ;;  %s607_s18 = scalar_lea.vmem %s334_s22, 128  ;;  %s697_s28 = smov [#allocation8]  }
  0x41   : > { %446 = vmatpush3.msra.mxu0 %v223_v3  ;;  %v219_v11 = vld [vmem:[#allocation6 + $0x50] sm:$0xff]  ;;  %v234_v12 = vld [vmem:[#allocation6 + $0xc8] sm:$0xff]  ;;  %v233_v15 = vld [vmem:[#allocation6 + $0xc0] sm:$0xff]  ;;  %p608_p1 = scmp.ne.s32.totalorder %s334_s22, %s607_s18  ;;  %s611_s29 = sshll.u32 %s697_s28, 4  ;;  %s612_s29 = int_to_ptr.vmem [resolvable:$false] %s611_s29 }
  0x42   : > { %447 = vmatprep.subr.mxu0 %v238_v4  ;;  %v208_v13 = vld [vmem:[%s832_s16 + $0x8] sm:$0xff]  ;;  %v217_v16 = vld [vmem:[#allocation6 + $0x40] sm:$0xff]  ;;  %v231_v19 = vld [vmem:[#allocation6 + $0xb0] sm:$0xff]  ;;  %s613_s12 = scalar_lea.vmem %s612_s29, 256  ;;  %p614_p0 = scmp.lt.s32.totalorder %s334_s22, %s612_s29 }
  0x43   : > { %448 = vmatpush3.msra.mxu0 %v222_v5  ;;  %v218_v14 = vld [vmem:[#allocation6 + $0x48] sm:$0xff]  ;;  %305 = vmatprep.mubr.f32.mxu0 %v208_v13  ;;  %v232_v17 = vld [vmem:[#allocation6 + $0xb8] sm:$0xff]  ;;  %v215_v20 = vld [vmem:[#allocation6 + $0x30] sm:$0xff]  ;;  %p609_p8 = pnand %p608_p1, %p800_p13  ;;  %p615_p2 = scmp.lt.s32.totalorder %s613_s12, %s607_s18 }
  0x44   : > { %449 = vmatprep.subr.mxu0 %v237_v6  ;;  %v216_v18 = vld [vmem:[#allocation6 + $0x38] sm:$0xff]  ;;  %v230_v21 = vld [vmem:[#allocation6 + $0xa8] sm:$0xff]  ;;  %v229_v23 = vld [vmem:[#allocation6 + $0xa0] sm:$0xff] }
  0x45   : > { %450 = vmatpush3.msra.mxu0 %v221_v7  ;;  %v214_v22 = vld [vmem:[#allocation6 + $0x28] sm:$0xff]  ;;  %v213_v24 = vld [vmem:[#allocation6 + $0x20] sm:$0xff]  ;;  %v228_v25 = vld [vmem:[#allocation6 + $0x98] sm:$0xff]  ;;  %p610_p10 = pneg %p609_p8  ;;  %p616_p3 = por %p615_p2, %p614_p0 }
  0x46   : > { %451 = vmatprep.subr.mxu0 %v236_v8  ;;  %v212_v26 = vld [vmem:[#allocation6 + $0x18] sm:$0xff]  ;;  %v227_v27 = vld [vmem:[#allocation6 + $0x90] sm:$0xff]  ;;  %v226_v29 = vld [vmem:[#allocation6 + $0x88] sm:$0xff] }
  0x47   : > { %452 = vmatpush3.msra.mxu0 %v220_v9  ;;  %v211_v28 = vld [vmem:[#allocation6 + $0x10] sm:$0xff]  ;;  %v210_v30 = vld [vmem:[#allocation6 + $0x8] sm:$0xff]  ;;  %v225_v31 = vld [vmem:[#allocation6 + $0x80] sm:$0xff]  ;;  %p617_p5 = pnand %p616_p3, %p610_p10 }
  0x48   : > { %453 = vmatprep.subr.mxu0 %v235_v10  ;;  %v209_v32 = vld [vmem:[#allocation6] sm:$0xff] }
  0x49   : > { %454 = vmatpush3.msra.mxu0 %v219_v11  ;;  %v207_v33 = vld [vmem:[%s832_s16] sm:$0xff] }
  0x4a   : > { %455 = vmatprep.subr.mxu0 %v234_v12 }
  0x4b   : > { %456 = vmatpush3.msra.mxu0 %v218_v14 }
  0x4c   : > { %457 = vmatprep.subr.mxu0 %v233_v15 }
  0x4d   : > { %458 = vmatpush3.msra.mxu0 %v217_v16 }
  0x4e   : > { %459 = vmatprep.subr.mxu0 %v232_v17 }
  0x4f   : > { %460 = vmatpush3.msra.mxu0 %v216_v18 }
  0x50   : > { %461 = vmatprep.subr.mxu0 %v231_v19 }
  0x51   : > { %462 = vmatpush3.msra.mxu0 %v215_v20 }
  0x52   : > { %463 = vmatprep.subr.mxu0 %v230_v21 }
  0x53   : > { %464 = vmatpush3.msra.mxu0 %v214_v22 }
  0x54   : > { %465 = vmatprep.subr.mxu0 %v229_v23 }
  0x55   : > { %466 = vmatpush3.msra.mxu0 %v213_v24 }
  0x56   : > { %467 = vmatprep.subr.mxu0 %v228_v25 }
  0x57   : > { %468 = vmatpush3.msra.mxu0 %v212_v26 }
  0x58   : > { %469 = vmatprep.subr.mxu0 %v227_v27 }
  0x59   : > { %470 = vmatpush3.msra.mxu0 %v211_v28 }
  0x5a   : > { %471 = vmatprep.subr.mxu0 %v226_v29 }
  0x5b   : > { %472 = vmatpush3.msra.mxu0 %v210_v30 }
  0x5c   : > { %473 = vmatprep.subr.mxu0 %v225_v31 }
  0x5d   : > { %474 = vmatpush3.msra.mxu0 %v209_v32 }
  0x5e   : > { %306 = vmatmul.mubr.f32.vlgmr.msra.gmra.mxu0 %v207_v33 }
 0x11e   : > { %v475_v34 = vpop.f32.mrf.mxu0 }
 0x120   : > { %v476_v35 = vpop.f32.mrf.mxu0 }
 0x121   : > { %v477_v36 = vadd.f32 %v476_v35, %v475_v34 }
 0x123   : > { %v317_v37 = vmul.f32 4.0, %v477_v36 }
 0x125   : > { %318 = vst [vmem:[%s198_s21] sm:$0xff] %v317_v37 }
 0x126   : > { %620 = shalt.err (!%p617_p5)
}
 0x127   : > { %s621_s30 = scalar_lea.hbm %s331_s26, 128  ;;  %s625_s4 = scalar_lea.hbm %s887_s2, 256 }
 0x128   : > { %p622_p7 = scmp.ne.s32.totalorder %s331_s26, %s621_s30  ;;  %p626_p9 = scmp.lt.s32.totalorder %s331_s26, %s887_s2 }
 0x129   : > { %p627_p11 = scmp.lt.s32.totalorder %s625_s4, %s621_s30 }
 0x12a   : > { %p623_p6 = pnand %p622_p7, %p800_p13 }
 0x12b   : > { %p628_p12 = por %p627_p11, %p626_p9 }
 0x12c   : > { %p624_p4 = pneg %p623_p6 }
 0x12e   : > { %p629_p1 = pnand %p628_p12, %p624_p4 }
 0x130   : > { %632 = shalt.err (!%p629_p1)
}
 0x131   : > { %484 = dma.vmem_to_hbm [thread:$0]  (%p800_p13), %s334_s22, 128, %s331_s26, %s320_s27  }
 0x132 PF: > { %s345_s16 = sand.u32 1, %s671_s9   ;;  %p899_p8 = scmp.ne.s32.totalorder %s892_s20, 0 }
 0x133   : > { %p900_p10 = scmp.ge.s32.totalorder %s691_s14, 2  ;;  %s346_s17 = scalar_lea.sflag [#allocation5], %s345_s16 }
 0x135   : > { %p495_p0 = pnand %p900_p10, %p899_p8 }
 0x137   : > { %p496_p2 = pneg %p495_p0 }
 0x139   : > { %666 = dma.done.wait (%p496_p2), %s346_s17, 128  }
 0x13a   : > { %668 = vsyncadd (%p496_p2), %s346_s17, 4294967168  ;;  %s19_s14 = sadd.s32 1, %s691_s14   ;;  %s901_s9 = smov %s675_s10 }
 0x13b   : > { %p16_p3 = scmp.ge.s32.totalorder %s19_s14, 4   ;;  %s902_s10 = smov %s679_s11 }
 0x13c   : > { %s903_s11 = smov %s809_s15  ;;  %s904_s12 = smov %s687_s13 }
 0x13d   : > { %s905_s13 = smov %s907_s25  ;;  %18 = sbr.rel (!%p16_p3) target bundleno = 7 (0x7), region = 86 }
 0x142   :  { %351 = vsyncpa [#allocation4], 1 }
 0x143   :  { %353 = vsyncpa [#allocation4 + $0x1], 1 }
 0x144   :  { %354 = vsyncpa [#allocation7], 1 }
 0x145   :  { %355 = vsyncpa [#allocation5], 1 }
 0x146   :  { %357 = vsyncpa [#allocation5 + $0x1], 1 }

</bundles_post_ra>
